<compile_context>
chip_gen: v7x
topology: tpu7x:2x2x1
jax: 0.10.0
libtpu: 0.0.40
codegen_flags: <defaults>
</compile_context>

<pallas_src>
import functools

import jax
import jax.numpy as jnp
from jax.experimental import pallas as pl
from jax.experimental.pallas import tpu as pltpu


def _round_up(x: int, m: int) -> int:
    return -(-x // m) * m


@functools.lru_cache(maxsize=1)
def _vmem_limit_bytes() -> int:
    """Generation-aware scoped-VMEM limit (v7x has 64 MiB/TC, v5e/v6e 128 MiB)."""
    try:
        cap = int(pltpu.get_tpu_info().vmem_capacity_bytes)
    except Exception:  # no TPU / interpret mode / API drift -> conservative default
        cap = 64 * 1024 * 1024
    return min((cap * 3) // 4, 96 * 1024 * 1024)


# ----------------------------------------------------------------------------- dropout prologue
def _dropout_kernel(x_ref, bits_ref, o_ref, *, keep_threshold: int, keep_scale: float):
    # keep iff bits >= round(p * 2^32)  ->  P(keep) = 1 - p   (matches torch.nn.Dropout)
    keep = bits_ref[...] >= jnp.uint32(keep_threshold)
    x = x_ref[...].astype(jnp.float32)
    o_ref[...] = (jnp.where(keep, x, 0.0) * jnp.float32(keep_scale)).astype(o_ref.dtype)


def _dropout_pallas(x_p, rng, drop_rate: float, *, tm: int, tk: int):
    """Apply inverted dropout to the (already padded) x once, via a small elementwise kernel."""
    B_p, K_p = x_p.shape
    bits = jax.random.bits(rng, (B_p, K_p), jnp.uint32)
    keep_threshold = min(int(round(float(drop_rate) * (2 ** 32))), 2 ** 32 - 1)
    keep_scale = 1.0 / (1.0 - float(drop_rate)) if float(drop_rate) < 1.0 else 0.0

    kernel = functools.partial(_dropout_kernel,
                               keep_threshold=keep_threshold, keep_scale=keep_scale)
    grid = (B_p // tm, K_p // tk)
    return pl.pallas_call(
        kernel,
        out_shape=jax.ShapeDtypeStruct((B_p, K_p), x_p.dtype),
        grid_spec=pltpu.PrefetchScalarGridSpec(
            num_scalar_prefetch=0,
            grid=grid,
            in_specs=[
                pl.BlockSpec((tm, tk), lambda i, k: (i, k)),
                pl.BlockSpec((tm, tk), lambda i, k: (i, k)),
            ],
            out_specs=pl.BlockSpec((tm, tk), lambda i, k: (i, k)),
        ),
        compiler_params=pltpu.CompilerParams(
            dimension_semantics=("parallel", "parallel"),
            vmem_limit_bytes=_vmem_limit_bytes(),
        ),
    )(x_p, bits)


# ----------------------------------------------------------------------------- tiled matmul + bias
def _matmul_kernel(x_ref, w_ref, b_ref, o_ref, *scratch, acc_in_out: bool):
    k = pl.program_id(2)

    if acc_in_out:
        # f32 output: the output block index is constant along k, so o_ref is resident
        # across the reduction -> accumulate directly, fold the bias in at k == 0.
        @pl.when(k == 0)
        def _():
            o_ref[...] = jnp.broadcast_to(b_ref[...], o_ref.shape)

        o_ref[...] += jnp.dot(x_ref[...], w_ref[...], preferred_element_type=jnp.float32)
    else:
        acc_ref = scratch[0]

        @pl.when(k == 0)
        def _():
            acc_ref[...] = jnp.zeros_like(acc_ref)

        acc_ref[...] += jnp.dot(x_ref[...], w_ref[...], preferred_element_type=jnp.float32)

        @pl.when(k == pl.num_programs(2) - 1)
        def _():
            o_ref[...] = (acc_ref[...] + b_ref[...]).astype(o_ref.dtype)


# ----------------------------------------------------------------------------- public API
def prepare_decoder_params(weight, bias, *, compute_dtype=jnp.bfloat16,
                           tn: int = 1024, tk: int = 1024):
    """One-time (model init) layout prep.

    weight: PyTorch Linear.weight layout (D_out, D_in)
    bias:   (D_out,)
    Returns a dict with the pre-transposed, pre-padded, pre-cast weight / bias and the
    chosen (tk, tn) tiling so that no per-forward padding of the big operand is needed.
    """
    D_out, D_in = weight.shape
    # v6e/v7x MXU is 256-wide: align K/N tiles to 256 when the dim allows; 128 otherwise.
    k_align = 256 if D_in >= 256 else 128
    n_align = 256 if D_out >= 256 else 128
    tk = min(tk, _round_up(D_in, k_align))
    tn = min(tn, _round_up(D_out, n_align))
    K_p = _round_up(D_in, tk)
    N_p = _round_up(D_out, tn)

    w_t = jnp.asarray(weight, compute_dtype).T          # (D_in, D_out) "decoder layout"
    if K_p != D_in or N_p != D_out:
        w_t = jnp.pad(w_t, ((0, K_p - D_in), (0, N_p - D_out)))
    b = jnp.asarray(bias, jnp.float32)                   # bias stays f32 (added to f32 acc)
    if N_p != D_out:
        b = jnp.pad(b, (0, N_p - D_out))
    b = b.reshape(1, N_p)

    return dict(w=w_t, b=b, d_in=D_in, d_out=D_out, tk=tk, tn=tn,
                dtype=jnp.dtype(compute_dtype))


def linear_decoder(x, params, *, drop_rate: float = 0.0, training: bool = False,
                   rng=None, tm: int = 512):
    """LinearDecoder forward: dropout(x) @ W^T + b  (W in PyTorch (out, in) layout at init)."""
    B, D_in = x.shape
    assert D_in == params["d_in"], "input feature size mismatch"
    w_p, b_p = params["w"], params["b"]
    K_p, N_p = w_p.shape
    tk, tn = params["tk"], params["tn"]
    dtype = params["dtype"]
    D_out = params["d_out"]

    tm = min(tm, _round_up(B, 8))
    B_p = _round_up(B, tm)

    x_p = jnp.asarray(x, dtype)
    if B_p != B or K_p != D_in:
        x_p = jnp.pad(x_p, ((0, B_p - B), (0, K_p - D_in)))

    # Dropout: applied exactly once (prologue kernel), not once per output-column tile.
    if bool(training) and float(drop_rate) > 0.0:
        if rng is None:
            rng = jax.random.PRNGKey(0)
        x_p = _dropout_pallas(x_p, rng, drop_rate, tm=tm, tk=tk)

    grid = (B_p // tm, N_p // tn, K_p // tk)
    acc_in_out = (dtype == jnp.dtype(jnp.float32))
    kernel = functools.partial(_matmul_kernel, acc_in_out=acc_in_out)
    scratch = [] if acc_in_out else [pltpu.VMEM((tm, tn), jnp.float32)]

    # Actual streamed HBM traffic: weight re-read per M-tile, x re-read per N-tile.
    bytes_accessed = (w_p.size * w_p.dtype.itemsize * (B_p // tm)
                      + x_p.size * x_p.dtype.itemsize * (N_p // tn)
                      + b_p.size * b_p.dtype.itemsize * (B_p // tm)
                      + B_p * N_p * dtype.itemsize)
    cost = pl.CostEstimate(flops=2 * B_p * K_p * N_p, transcendentals=0,
                           bytes_accessed=bytes_accessed)

    out_p = pl.pallas_call(
        kernel,
        out_shape=jax.ShapeDtypeStruct((B_p, N_p), dtype),
        grid_spec=pltpu.PrefetchScalarGridSpec(
            num_scalar_prefetch=0,
            grid=grid,
            in_specs=[
                pl.BlockSpec((tm, tk), lambda i, j, k: (i, k)),
                # NOTE: if profiling shows exposed weight DMA at K boundaries, add
                # pipeline_mode=pl.Buffered(3) here (costs one extra tk*tn buffer).
                pl.BlockSpec((tk, tn), lambda i, j, k: (k, j)),
                pl.BlockSpec((1, tn), lambda i, j, k: (0, j)),
            ],
            out_specs=pl.BlockSpec((tm, tn), lambda i, j, k: (i, j)),
            scratch_shapes=scratch,
        ),
        compiler_params=pltpu.CompilerParams(
            dimension_semantics=("parallel", "parallel", "arbitrary"),
            vmem_limit_bytes=_vmem_limit_bytes(),
        ),
        cost_estimate=cost,
    )(x_p, w_p, b_p)

    if B_p != B or N_p != D_out:
        out_p = out_p[:B, :D_out]
    return out_p


# ----------------------------------------------------------------------------- demo / self-test
if __name__ == "__main__":
    key = jax.random.PRNGKey(0)
    kx, kw, kb, kd = jax.random.split(key, 4)

    batch, input_size, output_size = 8, 32, 16
    drop_rate = 0.1

    x = jax.random.normal(kx, (batch, input_size), dtype=jnp.float32)
    # PyTorch-shaped params: Linear.weight (out, in), Linear.bias (out,)
    bound = 1.0 / (input_size ** 0.5)
    weight = jax.random.uniform(kw, (output_size, input_size),
                                minval=-bound, maxval=bound, dtype=jnp.float32)
    bias = jax.random.uniform(kb, (output_size,),
                              minval=-bound, maxval=bound, dtype=jnp.float32)

    ref = jnp.dot(x, weight.T, precision=jax.lax.Precision.HIGHEST) + bias

    # --- f32 path (exactness check, eval mode: dropout == identity) -----------------
    params_f32 = prepare_decoder_params(weight, bias, compute_dtype=jnp.float32)
    out_f32 = jax.block_until_ready(
        linear_decoder(x, params_f32, drop_rate=drop_rate, training=False))
    assert out_f32.shape == (batch, output_size)
    assert jnp.allclose(out_f32, ref, atol=5e-4, rtol=5e-4), "f32 mismatch vs reference"

    # --- bf16 path (default compute dtype per perf review) ---------------------------
    params_bf16 = prepare_decoder_params(weight, bias, compute_dtype=jnp.bfloat16)
    out_bf16 = jax.block_until_ready(
        linear_decoder(x, params_bf16, drop_rate=drop_rate, training=False))
    assert out_bf16.shape == (batch, output_size)
    assert jnp.allclose(out_bf16.astype(jnp.float32), ref, atol=5e-2, rtol=5e-2), \
        "bf16 mismatch vs reference"

    # --- training mode (exercises the dropout prologue kernel) -----------------------
    out_tr = jax.block_until_ready(
        linear_decoder(x, params_bf16, drop_rate=drop_rate, training=True, rng=kd))
    assert out_tr.shape == (batch, output_size)
    assert bool(jnp.all(jnp.isfinite(out_tr)))
    # With p=0.1 over 8x32 inputs, the output must differ from the eval-mode output.
    assert not jnp.allclose(out_tr.astype(jnp.float32),
                            out_bf16.astype(jnp.float32), atol=1e-6, rtol=1e-6)

    print("KERNEL_OK")
</pallas_src>

<mosaic_0001>
module attributes {stable_mosaic.version = 11 : i64} {
  func.func @_matmul_kernel(%arg0: i32, %arg1: i32, %arg2: i32, %arg3: memref<8x128xf32, #tpu.memory_space<vmem>>, %arg4: memref<128x128xf32, #tpu.memory_space<vmem>>, %arg5: memref<1x128xf32, #tpu.memory_space<vmem>>, %arg6: memref<8x128xf32, #tpu.memory_space<vmem>>) attributes {dimension_semantics = [#tpu.dimension_semantics<parallel>, #tpu.dimension_semantics<parallel>, #tpu.dimension_semantics<arbitrary>], iteration_bounds = array<i64: 1, 1, 1>, scalar_prefetch = 0 : i64, scratch_operands = 0 : i64, tpu.core_type = #tpu.core_type<tc>, window_params = [{transform_indices = @transform_0, window_bounds = array<i64: 8, 128>}, {transform_indices = @transform_1, window_bounds = array<i64: 128, 128>}, {transform_indices = @transform_2, window_bounds = array<i64: 1, 128>}, {transform_indices = @transform_3, window_bounds = array<i64: 8, 128>}]} {
    %c0_i32 = arith.constant 0 : i32
    %0 = arith.cmpi eq, %arg2, %c0_i32 : i32
    %1 = arith.extui %0 : i1 to i32
    %c0_i32_0 = arith.constant 0 : i32
    %2 = arith.cmpi ne, %1, %c0_i32_0 : i32
    scf.if %2 {
      %c0_8 = arith.constant 0 : index
      %c0_9 = arith.constant 0 : index
      %9 = vector.load %arg5[%c0_8, %c0_9] : memref<1x128xf32, #tpu.memory_space<vmem>>, vector<1x128xf32>
      %10 = vector.shape_cast %9 : vector<1x128xf32> to vector<1x128xf32>
      %11 = vector.broadcast %10 : vector<1x128xf32> to vector<8x128xf32>
      %c0_10 = arith.constant 0 : index
      %c0_11 = arith.constant 0 : index
      %12 = vector.load %arg6[%c0_10, %c0_11] : memref<8x128xf32, #tpu.memory_space<vmem>>, vector<8x128xf32>
      tpu.vector_store %arg6[%c0_10, %c0_11], %11 {strides = array<i32>} : memref<8x128xf32, #tpu.memory_space<vmem>>, vector<8x128xf32>,
    } else {
    }
    %c0 = arith.constant 0 : index
    %c0_1 = arith.constant 0 : index
    %3 = vector.load %arg6[%c0, %c0_1] : memref<8x128xf32, #tpu.memory_space<vmem>>, vector<8x128xf32>
    %c0_2 = arith.constant 0 : index
    %c0_3 = arith.constant 0 : index
    %4 = vector.load %arg3[%c0_2, %c0_3] : memref<8x128xf32, #tpu.memory_space<vmem>>, vector<8x128xf32>
    %c0_4 = arith.constant 0 : index
    %c0_5 = arith.constant 0 : index
    %5 = vector.load %arg4[%c0_4, %c0_5] : memref<128x128xf32, #tpu.memory_space<vmem>>, vector<128x128xf32>
    %cst = arith.constant dense<0.000000e+00> : vector<8x128xf32>
    %6 = tpu.matmul %4, %5, %cst {dimension_numbers = #tpu.dot_dimension_numbers<[1], [0], [0], [1], [0, 0, 1, 1], [], []>} : vector<8x128xf32>, vector<128x128xf32>, vector<8x128xf32> -> vector<8x128xf32>
    %7 = arith.addf %3, %6 : vector<8x128xf32>
    %c0_6 = arith.constant 0 : index
    %c0_7 = arith.constant 0 : index
    %8 = vector.load %arg6[%c0_6, %c0_7] : memref<8x128xf32, #tpu.memory_space<vmem>>, vector<8x128xf32>
    tpu.vector_store %arg6[%c0_6, %c0_7], %7 {strides = array<i32>} : memref<8x128xf32, #tpu.memory_space<vmem>>, vector<8x128xf32>,
    return
  }
  func.func @transform_0(%arg0: i32, %arg1: i32, %arg2: i32) -> (i32, i32) {
    %c0_i32 = arith.constant 0 : i32
    return %arg0, %arg2 : i32, i32
  }
  func.func @transform_1(%arg0: i32, %arg1: i32, %arg2: i32) -> (i32, i32) {
    %c0_i32 = arith.constant 0 : i32
    return %arg2, %arg1 : i32, i32
  }
  func.func @transform_2(%arg0: i32, %arg1: i32, %arg2: i32) -> (i32, i32) {
    %c0_i32 = arith.constant 0 : i32
    %c0_i32_0 = arith.constant 0 : i32
    return %c0_i32, %arg1 : i32, i32
  }
  func.func @transform_3(%arg0: i32, %arg1: i32, %arg2: i32) -> (i32, i32) {
    %c0_i32 = arith.constant 0 : i32
    return %arg0, %arg1 : i32, i32
  }
}

</mosaic_0001>

<bundles_post_ra>
// kernel: tpu_custom_call.1
= control target key start
LH: loop header
LB: loop body
LE: loop exit
PB: predicated region body
PF: predicated region fallthrough
CT: control target
= control target key end

     0   :  { %8 = vsyncpa [#allocation3], 0  ;;  %s390_s0 = inlined_call_operand.hbm [shape: f32[8,128], index: 0, kind: input, shape index: {}]   ;;  %s391_s1 = inlined_call_operand.hbm [shape: f32[128,128], index: 1, kind: input, shape index: {}]   ;;  %s392_s2 = inlined_call_operand.vmem [shape: f32[1,128], index: 2, kind: input, shape index: {}]   ;;  %s393_s3 = inlined_call_operand.hbm [shape: f32[8,128], index: 3, kind: output, shape index: {}]  }
   0x1   :  { %9 = vsyncpa [#allocation6], 0 }
   0x2   :  { %10 = vsyncpa [#allocation4], 0  ;;  %s316_s12 = smov [#allocation2]   ;;  %s317_s14 = smov [#allocation5]  }
   0x3   :  { %s17_s13 = sshll.u32 %s316_s12, 4  ;;  %s26_s15 = sshll.u32 %s317_s14, 4  ;;  %s18_s13 = int_to_ptr.vmem [resolvable:$true] %s17_s13  ;;  %s344_s15 = int_to_ptr.vmem [resolvable:$true] %s26_s15 }
   0x4   :  { %s244_s18 = scalar_lea.hbm %s390_s0, 128 }
   0x5   :  { %p245_p0 = scmp.ne.s32.totalorder %s390_s0, %s244_s18  ;;  %p248_p1 = scmp.lt.u32.totalorder %s244_s18, %s390_s0 }
   0x7   :  { %p250_p2 = pnand %p248_p1, %p245_p0 }
   0x9   :  { %253 = shalt.err (!%p250_p2)
}
   0xa   :  { %s254_s23 = scalar_lea.vmem %s18_s13, 128  ;;  %p259_p4 = scmp.lt.s32.totalorder %s18_s13, %s18_s13 }
   0xb   :  { %p255_p3 = scmp.ne.s32.totalorder %s18_s13, %s254_s23  ;;  %p260_p5 = scmp.lt.s32.totalorder %s254_s23, %s254_s23 }
   0xd   :  { %p261_p6 = por %p260_p5, %p259_p4 }
   0xf   :  { %p262_p7 = pnand %p261_p6, %p255_p3 }
  0x11   :  { %265 = shalt.err (!%p262_p7)
}
  0x12   :  { %20 = dma.hbm_to_vmem [thread:$0]  %s390_s0, 128, %s18_s13, [#allocation3]  }
  0x13   :  { %s266_s28 = scalar_lea.hbm %s391_s1, 2048 }
  0x14   :  { %p267_p8 = scmp.ne.s32.totalorder %s391_s1, %s266_s28  ;;  %p270_p9 = scmp.lt.u32.totalorder %s266_s28, %s391_s1 }
  0x16   :  { %p272_p10 = pnand %p270_p9, %p267_p8 }
  0x18   :  { %275 = shalt.err (!%p272_p10)
}
  0x19   :  { %s276_s6 = scalar_lea.vmem %s344_s15, 2048  ;;  %p281_p12 = scmp.lt.s32.totalorder %s344_s15, %s344_s15 }
  0x1a   :  { %p277_p11 = scmp.ne.s32.totalorder %s344_s15, %s276_s6  ;;  %p282_p13 = scmp.lt.s32.totalorder %s276_s6, %s276_s6 }
  0x1c   :  { %p283_p0 = por %p282_p13, %p281_p12 }
  0x1e   :  { %p284_p1 = pnand %p283_p0, %p277_p11 }
  0x20   :  { %287 = shalt.err (!%p284_p1)
}
  0x21   :  { %s318_s0 = smov 128   ;;  %s319_s7 = smov 8  }
  0x22   :  { %32 = dma.hbm_to_vmem [thread:$0]  %s391_s1, 2048, %s344_s15, [#allocation6], %s318_s0, %s318_s0, %s319_s7  }
  0x23   :  { %310 = dma.done.wait [#allocation3], 128  }
  0x24   :  { %311 = vsyncadd [#allocation3], 4294967168 }
  0x25   :  { %312 = dma.done.wait [#allocation6], 2048  }
  0x26   :  { %313 = vsyncadd [#allocation6], 4294965248  ;;  %v320_v0 = vmov 0.0|0.0   ;;  %vm321_vm0 = vmmov 0   ;;  %v322_v1 = vmov 0.0   ;;  %v55_v2 = vld [vmem:[#allocation5] sm:$0xff] }
  0x27   :  { %212 = vmatprep.subr.bf16.mxu0 %v320_v0  ;;  %209 = vmatprep.mubr.msk.f32.mxu0 %vm321_vm0, %v322_v1  ;;  %v56_v3 = vld [vmem:[#allocation5 + $0x8] sm:$0xff]  ;;  %v57_v4 = vld [vmem:[#allocation5 + $0x10] sm:$0xff]  ;;  %v58_v6 = vld [vmem:[#allocation5 + $0x18] sm:$0xff]  ;;  %s323_s11 = smov [#allocation7]  }
  0x28   :  { %v213_v5 = vpack.c.bf16 %v56_v3, %v55_v2  ;;  %v216_v7 = vpack.c.bf16 %v58_v6, %v57_v4  ;;  %v59_v8 = vld [vmem:[#allocation5 + $0x20] sm:$0xff]  ;;  %v60_v9 = vld [vmem:[#allocation5 + $0x28] sm:$0xff]  ;;  %v61_v11 = vld [vmem:[#allocation5 + $0x30] sm:$0xff]  ;;  %s149_s12 = sshll.u32 %s323_s11, 4  ;;  %s150_s12 = int_to_ptr.vmem [resolvable:$true] %s149_s12 }
  0x29   :  { %v219_v10 = vpack.c.bf16 %v60_v9, %v59_v8  ;;  %v62_v12 = vld [vmem:[#allocation5 + $0x38] sm:$0xff]  ;;  %v63_v14 = vld [vmem:[#allocation5 + $0x40] sm:$0xff]  ;;  %v64_v15 = vld [vmem:[#allocation5 + $0x48] sm:$0xff]  ;;  %s288_s13 = scalar_lea.vmem %s150_s12, 128  ;;  %p293_p3 = scmp.lt.s32.totalorder %s150_s12, %s150_s12 }
  0x2a   :  { %214 = vmatpush3.bf16.msra.mxu0 %v213_v5  ;;  %v222_v13 = vpack.c.bf16 %v62_v12, %v61_v11  ;;  %v225_v16 = vpack.c.bf16 %v64_v15, %v63_v14  ;;  %v65_v17 = vld [vmem:[#allocation5 + $0x50] sm:$0xff]  ;;  %v66_v18 = vld [vmem:[#allocation5 + $0x58] sm:$0xff]  ;;  %v67_v20 = vld [vmem:[#allocation5 + $0x60] sm:$0xff]  ;;  %p289_p2 = scmp.ne.s32.totalorder %s150_s12, %s288_s13  ;;  %p294_p4 = scmp.lt.s32.totalorder %s288_s13, %s288_s13 }
  0x2b   :  { %215 = vmatprep.subr.bf16.mxu0 %v320_v0  ;;  %v228_v19 = vpack.c.bf16 %v66_v18, %v65_v17  ;;  %v68_v21 = vld [vmem:[#allocation5 + $0x68] sm:$0xff]  ;;  %v69_v23 = vld [vmem:[#allocation5 + $0x70] sm:$0xff]  ;;  %v70_v24 = vld [vmem:[#allocation5 + $0x78] sm:$0xff] }
  0x2c   :  { %v231_v22 = vpack.c.bf16 %v68_v21, %v67_v20  ;;  %v234_v25 = vpack.c.bf16 %v70_v24, %v69_v23  ;;  %v54_v26 = vld [vmem:[#allocation2] sm:$0xff]  ;;  %p295_p5 = por %p294_p4, %p293_p3 }
  0x2d   :  { %v159_v27 = vld [vmem:[%s392_s2] ss:$0 sm:$0xff] }
  0x2e   :  { %217 = vmatpush3.bf16.msra.mxu0 %v216_v7  ;;  %p296_p6 = pnand %p295_p5, %p289_p2 }
  0x2f   :  { %218 = vmatprep.subr.bf16.mxu0 %v320_v0 }
  0x32   :  { %220 = vmatpush3.bf16.msra.mxu0 %v219_v10 }
  0x33   :  { %221 = vmatprep.subr.bf16.mxu0 %v320_v0 }
  0x36   :  { %223 = vmatpush3.bf16.msra.mxu0 %v222_v13 }
  0x37   :  { %224 = vmatprep.subr.bf16.mxu0 %v320_v0 }
  0x3a   :  { %226 = vmatpush3.bf16.msra.mxu0 %v225_v16 }
  0x3b   :  { %227 = vmatprep.subr.bf16.mxu0 %v320_v0 }
  0x3e   :  { %229 = vmatpush3.bf16.msra.mxu0 %v228_v19 }
  0x3f   :  { %230 = vmatprep.subr.bf16.mxu0 %v320_v0 }
  0x42   :  { %232 = vmatpush3.bf16.msra.mxu0 %v231_v22 }
  0x43   :  { %233 = vmatprep.subr.bf16.mxu0 %v320_v0 }
  0x46   :  { %235 = vmatpush3.bf16.msra.mxu0 %v234_v25 }
  0x49   :  { %210 = vmatmul.mubr.f32.vlgmr.msra.gmra.mrb[0].mxu0 %v54_v26 }
 0x11c   :  { %v137_v28 = vpop.f32.mrb[0].mxu0 }
 0x11d   :  { %v141_v29 = vadd.f32 %v159_v27, %v137_v28  ;;  %v211_v30 = vpop.f32.mrb[1].mxu0 }
 0x11f   :  { %142 = vst [vmem:[#allocation7] sm:$0xff] %v141_v29 }
 0x120   :  { %299 = shalt.err (!%p296_p6)
}
 0x121   :  { %s300_s16 = scalar_lea.hbm %s393_s3, 128 }
 0x122   :  { %p301_p7 = scmp.ne.s32.totalorder %s393_s3, %s300_s16  ;;  %p304_p8 = scmp.lt.u32.totalorder %s300_s16, %s393_s3 }
 0x124   :  { %p306_p9 = pnand %p304_p8, %p301_p7 }
 0x126   :  { %309 = shalt.err (!%p306_p9)
}
 0x127   :  { %152 = dma.vmem_to_hbm [thread:$0]  %s150_s12, 128, %s393_s3, [#allocation4]  }
 0x128   :  { %314 = dma.done.wait [#allocation4], 128  }
 0x129   :  { %315 = vsyncadd [#allocation4], 4294967168 }
 0x12a   :  { %156 = vsyncpa [#allocation3], 1 }
 0x12b   :  { %157 = vsyncpa [#allocation6], 1 }
 0x12c   :  { %158 = vsyncpa [#allocation4], 1 }

</bundles_post_ra>
